<compile_context>
chip_gen: v5e
topology: v5e:2x2
jax: 0.10.0
libtpu: 0.0.40
codegen_flags: <defaults>
</compile_context>

<pallas_src>
import jax
import jax.numpy as jnp
from jax.experimental import pallas as pl
from jax.experimental.pallas import tpu as pltpu

HIDDEN = 32                 # out_features of Linear(1, 32, bias=False)
_GROUP = 128 // HIDDEN      # 4 output rows packed into one 128-lane slab row
_DEFAULT_TILE_G = 4096      # slab rows per grid step (= 16384 input rows)


def _round_up(x, m):
    return ((x + m - 1) // m) * m


def _perceptron_kernel(x0_ref, x1_ref, x2_ref, x3_ref,
                       w0_ref, w1_ref, w2_ref, w3_ref, o_ref):
    # xk_ref: (TILE_G, 1) input columns (x[4g + k]);  wk_ref: (1, 128) weight row, equal to
    # w[j % 32] on lane group k and 0 elsewhere.  Each term is an outer-product broadcast.
    acc = x0_ref[...].astype(jnp.float32) * w0_ref[...]
    acc = acc + x1_ref[...].astype(jnp.float32) * w1_ref[...]
    acc = acc + x2_ref[...].astype(jnp.float32) * w2_ref[...]
    acc = acc + x3_ref[...].astype(jnp.float32) * w3_ref[...]
    o_ref[...] = jnp.maximum(acc, 0.0).astype(o_ref.dtype)   # lane-dense 128-wide store


def one_layer_perception(trains_set, weight, *, out_dtype=None, xla_fallback_rows=0):
    """relu(trains_set @ weight.T).  trains_set: (..., 1); weight: (32, 1) (PyTorch layout)."""
    assert trains_set.shape[-1] == 1, "Linear layer expects in_features == 1"
    assert weight.shape == (HIDDEN, 1)
    lead = trains_set.shape[:-1]
    if out_dtype is None:
        out_dtype = jnp.result_type(trains_set.dtype, weight.dtype)

    rows = 1
    for d in lead:
        rows *= d

    # Tiny-input fallback: pallas_call launch overhead dwarfs the work and XLA fuses this
    # elementwise op into neighbours.  Kept at 0 by default so the demo exercises the kernel
    # (set e.g. xla_fallback_rows=65536 in production).
    if rows == 0 or rows < xla_fallback_rows:
        y = trains_set.astype(jnp.float32) * weight.reshape(HIDDEN).astype(jnp.float32)
        return jnp.maximum(y, 0.0).astype(out_dtype)

    # --- layout / padding -------------------------------------------------------------
    g_rows = -(-rows // _GROUP)                              # ceil(rows / 4) slab rows
    tile_g = min(_DEFAULT_TILE_G, _round_up(g_rows, 8))      # multiple of 8 sublanes
    g_pad = _round_up(g_rows, tile_g)
    rows_pad = g_pad * _GROUP

    x_flat = jnp.pad(trains_set.reshape(rows), (0, rows_pad - rows))
    x_cols = x_flat.reshape(g_pad, _GROUP)                   # column k holds x[4g + k]
    x_col = [x_cols[:, k:k + 1] for k in range(_GROUP)]      # each (g_pad, 1)

    # Weight tiled 4x along the 128 lanes and masked per 32-lane group.
    w_vec = weight.reshape(HIDDEN).astype(jnp.float32)
    w_tiled = jnp.tile(w_vec, _GROUP)                        # (128,) == w[j % 32]
    lane_group = jnp.arange(128) // HIDDEN                   # (128,) in {0,1,2,3}
    w_row = [jnp.where(lane_group == k, w_tiled, 0.0).reshape(1, 128)
             for k in range(_GROUP)]

    # --- pallas call ------------------------------------------------------------------
    grid = (g_pad // tile_g,)
    col_spec = pl.BlockSpec((tile_g, 1), lambda i: (i, 0))
    w_spec = pl.BlockSpec((1, 128), lambda i: (0, 0))

    out_slab = pl.pallas_call(
        _perceptron_kernel,
        out_shape=jax.ShapeDtypeStruct((g_pad, 128), out_dtype),
        grid_spec=pltpu.PrefetchScalarGridSpec(
            num_scalar_prefetch=0,
            grid=grid,
            in_specs=[col_spec] * _GROUP + [w_spec] * _GROUP,
            out_specs=pl.BlockSpec((tile_g, 128), lambda i: (i, 0)),
        ),
        compiler_params=pltpu.CompilerParams(
            dimension_semantics=("parallel",),
            vmem_limit_bytes=32 * 1024 * 1024,
        ),
    )(*x_col, *w_row)

    # (g_pad, 128) and (rows_pad, 32) are the same row-major buffer: free reshape.
    out = out_slab.reshape(rows_pad, HIDDEN)[:rows]
    return out.reshape(*lead, HIDDEN)


if __name__ == "__main__":
    key = jax.random.PRNGKey(0)
    k_w, k_x1, k_x2 = jax.random.split(key, 3)

    # PyTorch default Linear init: U(-1/sqrt(in_features), 1/sqrt(in_features)) = U(-1, 1).
    weight = jax.random.uniform(k_w, (HIDDEN, 1), jnp.float32, minval=-1.0, maxval=1.0)

    # Small input consistent with the module: (batch=2, seq=8, features=1).
    x_small = jax.random.normal(k_x1, (2, 8, 1), jnp.float32)
    y_small = one_layer_perception(x_small, weight)
    jax.block_until_ready(y_small)
    ref_small = jnp.maximum(jnp.einsum("...i,hi->...h", x_small, weight), 0.0)
    assert y_small.shape == (2, 8, HIDDEN)
    assert jnp.allclose(y_small, ref_small, atol=1e-6), "small-case mismatch vs reference"

    # Medium input: exercises multi-tile grid, rows % 4 != 0, and row padding.
    x_med = jax.random.normal(k_x2, (3, 7001, 1), jnp.float32)
    y_med = one_layer_perception(x_med, weight)
    jax.block_until_ready(y_med)
    ref_med = jnp.maximum(jnp.einsum("...i,hi->...h", x_med, weight), 0.0)
    assert y_med.shape == (3, 7001, HIDDEN)
    assert jnp.allclose(y_med, ref_med, atol=1e-6), "medium-case mismatch vs reference"

    print("KERNEL_OK")
</pallas_src>

<mosaic_0001>
module attributes {stable_mosaic.version = 11 : i64} {
  func.func @_perceptron_kernel(%arg0: i32, %arg1: memref<8x1xf32, #tpu.memory_space<vmem>>, %arg2: memref<8x1xf32, #tpu.memory_space<vmem>>, %arg3: memref<8x1xf32, #tpu.memory_space<vmem>>, %arg4: memref<8x1xf32, #tpu.memory_space<vmem>>, %arg5: memref<1x128xf32, #tpu.memory_space<vmem>>, %arg6: memref<1x128xf32, #tpu.memory_space<vmem>>, %arg7: memref<1x128xf32, #tpu.memory_space<vmem>>, %arg8: memref<1x128xf32, #tpu.memory_space<vmem>>, %arg9: memref<8x128xf32, #tpu.memory_space<vmem>>) attributes {dimension_semantics = [#tpu.dimension_semantics<parallel>], iteration_bounds = array<i64: 1>, scalar_prefetch = 0 : i64, scratch_operands = 0 : i64, tpu.core_type = #tpu.core_type<tc>, window_params = [{transform_indices = @transform_0, window_bounds = array<i64: 8, 1>}, {transform_indices = @transform_1, window_bounds = array<i64: 8, 1>}, {transform_indices = @transform_2, window_bounds = array<i64: 8, 1>}, {transform_indices = @transform_3, window_bounds = array<i64: 8, 1>}, {pipeline_mode = #tpu.pipeline_mode<synchronous>, transform_indices = @transform_4, window_bounds = array<i64: 1, 128>}, {pipeline_mode = #tpu.pipeline_mode<synchronous>, transform_indices = @transform_5, window_bounds = array<i64: 1, 128>}, {pipeline_mode = #tpu.pipeline_mode<synchronous>, transform_indices = @transform_6, window_bounds = array<i64: 1, 128>}, {pipeline_mode = #tpu.pipeline_mode<synchronous>, transform_indices = @transform_7, window_bounds = array<i64: 1, 128>}, {transform_indices = @transform_8, window_bounds = array<i64: 8, 128>}]} {
    %c0 = arith.constant 0 : index
    %c0_0 = arith.constant 0 : index
    %0 = vector.load %arg1[%c0, %c0_0] : memref<8x1xf32, #tpu.memory_space<vmem>>, vector<8x1xf32>
    %c0_1 = arith.constant 0 : index
    %c0_2 = arith.constant 0 : index
    %1 = vector.load %arg5[%c0_1, %c0_2] : memref<1x128xf32, #tpu.memory_space<vmem>>, vector<1x128xf32>
    %2 = vector.broadcast %0 : vector<8x1xf32> to vector<8x128xf32>
    %3 = vector.broadcast %1 : vector<1x128xf32> to vector<8x128xf32>
    %4 = arith.mulf %2, %3 : vector<8x128xf32>
    %c0_3 = arith.constant 0 : index
    %c0_4 = arith.constant 0 : index
    %5 = vector.load %arg2[%c0_3, %c0_4] : memref<8x1xf32, #tpu.memory_space<vmem>>, vector<8x1xf32>
    %c0_5 = arith.constant 0 : index
    %c0_6 = arith.constant 0 : index
    %6 = vector.load %arg6[%c0_5, %c0_6] : memref<1x128xf32, #tpu.memory_space<vmem>>, vector<1x128xf32>
    %7 = vector.broadcast %5 : vector<8x1xf32> to vector<8x128xf32>
    %8 = vector.broadcast %6 : vector<1x128xf32> to vector<8x128xf32>
    %9 = arith.mulf %7, %8 : vector<8x128xf32>
    %10 = arith.addf %4, %9 : vector<8x128xf32>
    %c0_7 = arith.constant 0 : index
    %c0_8 = arith.constant 0 : index
    %11 = vector.load %arg3[%c0_7, %c0_8] : memref<8x1xf32, #tpu.memory_space<vmem>>, vector<8x1xf32>
    %c0_9 = arith.constant 0 : index
    %c0_10 = arith.constant 0 : index
    %12 = vector.load %arg7[%c0_9, %c0_10] : memref<1x128xf32, #tpu.memory_space<vmem>>, vector<1x128xf32>
    %13 = vector.broadcast %11 : vector<8x1xf32> to vector<8x128xf32>
    %14 = vector.broadcast %12 : vector<1x128xf32> to vector<8x128xf32>
    %15 = arith.mulf %13, %14 : vector<8x128xf32>
    %16 = arith.addf %10, %15 : vector<8x128xf32>
    %c0_11 = arith.constant 0 : index
    %c0_12 = arith.constant 0 : index
    %17 = vector.load %arg4[%c0_11, %c0_12] : memref<8x1xf32, #tpu.memory_space<vmem>>, vector<8x1xf32>
    %c0_13 = arith.constant 0 : index
    %c0_14 = arith.constant 0 : index
    %18 = vector.load %arg8[%c0_13, %c0_14] : memref<1x128xf32, #tpu.memory_space<vmem>>, vector<1x128xf32>
    %19 = vector.broadcast %17 : vector<8x1xf32> to vector<8x128xf32>
    %20 = vector.broadcast %18 : vector<1x128xf32> to vector<8x128xf32>
    %21 = arith.mulf %19, %20 : vector<8x128xf32>
    %22 = arith.addf %16, %21 : vector<8x128xf32>
    %cst = arith.constant 0.000000e+00 : f32
    %23 = vector.broadcast %cst : f32 to vector<8x128xf32>
    %24 = arith.maximumf %22, %23 : vector<8x128xf32>
    %c0_15 = arith.constant 0 : index
    %c0_16 = arith.constant 0 : index
    %25 = vector.load %arg9[%c0_15, %c0_16] : memref<8x128xf32, #tpu.memory_space<vmem>>, vector<8x128xf32>
    tpu.vector_store %arg9[%c0_15, %c0_16], %24 {strides = array<i32>} : memref<8x128xf32, #tpu.memory_space<vmem>>, vector<8x128xf32>,
    return
  }
  func.func @transform_0(%arg0: i32) -> (i32, i32) {
    %c0_i32 = arith.constant 0 : i32
    %c0_i32_0 = arith.constant 0 : i32
    return %arg0, %c0_i32 : i32, i32
  }
  func.func @transform_1(%arg0: i32) -> (i32, i32) {
    %c0_i32 = arith.constant 0 : i32
    %c0_i32_0 = arith.constant 0 : i32
    return %arg0, %c0_i32 : i32, i32
  }
  func.func @transform_2(%arg0: i32) -> (i32, i32) {
    %c0_i32 = arith.constant 0 : i32
    %c0_i32_0 = arith.constant 0 : i32
    return %arg0, %c0_i32 : i32, i32
  }
  func.func @transform_3(%arg0: i32) -> (i32, i32) {
    %c0_i32 = arith.constant 0 : i32
    %c0_i32_0 = arith.constant 0 : i32
    return %arg0, %c0_i32 : i32, i32
  }
  func.func @transform_4(%arg0: i32) -> (i32, i32) {
    %c0_i32 = arith.constant 0 : i32
    %c0_i32_0 = arith.constant 0 : i32
    %c0_i32_1 = arith.constant 0 : i32
    return %c0_i32, %c0_i32_0 : i32, i32
  }
  func.func @transform_5(%arg0: i32) -> (i32, i32) {
    %c0_i32 = arith.constant 0 : i32
    %c0_i32_0 = arith.constant 0 : i32
    %c0_i32_1 = arith.constant 0 : i32
    return %c0_i32, %c0_i32_0 : i32, i32
  }
  func.func @transform_6(%arg0: i32) -> (i32, i32) {
    %c0_i32 = arith.constant 0 : i32
    %c0_i32_0 = arith.constant 0 : i32
    %c0_i32_1 = arith.constant 0 : i32
    return %c0_i32, %c0_i32_0 : i32, i32
  }
  func.func @transform_7(%arg0: i32) -> (i32, i32) {
    %c0_i32 = arith.constant 0 : i32
    %c0_i32_0 = arith.constant 0 : i32
    %c0_i32_1 = arith.constant 0 : i32
    return %c0_i32, %c0_i32_0 : i32, i32
  }
  func.func @transform_8(%arg0: i32) -> (i32, i32) {
    %c0_i32 = arith.constant 0 : i32
    %c0_i32_0 = arith.constant 0 : i32
    return %arg0, %c0_i32 : i32, i32
  }
}

</mosaic_0001>

<bundles_post_ra>
// kernel: tpu_custom_call.1
= control target key start
LH: loop header
LB: loop body
LE: loop exit
PB: predicated region body
PF: predicated region fallthrough
CT: control target
= control target key end

     0   :  { %v129_v2 = vmov 0   ;;  %s203_s0 = inlined_call_operand.vmem [shape: f32[8,1], index: 0, kind: input, shape index: {}]   ;;  %s204_s1 = inlined_call_operand.vmem [shape: f32[8,1], index: 1, kind: input, shape index: {}]   ;;  %s205_s2 = inlined_call_operand.vmem [shape: f32[8,1], index: 2, kind: input, shape index: {}]   ;;  %s206_s3 = inlined_call_operand.vmem [shape: f32[8,1], index: 3, kind: input, shape index: {}]   ;;  %s207_s4 = inlined_call_operand.vmem [shape: f32[1,128], index: 4, kind: input, shape index: {}]   ;;  %s208_s5 = inlined_call_operand.vmem [shape: f32[1,128], index: 5, kind: input, shape index: {}]   ;;  %s209_s6 = inlined_call_operand.vmem [shape: f32[1,128], index: 6, kind: input, shape index: {}]   ;;  %s210_s7 = inlined_call_operand.vmem [shape: f32[1,128], index: 7, kind: input, shape index: {}]   ;;  %s211_s8 = inlined_call_operand.hbm [shape: f32[8,128], index: 8, kind: output, shape index: {}]  }
   0x1   :  { %v53_v0 = vld [vmem:[%s205_s2] sm:$0xff]  ;;  %98 = vset.pattern.permute.xlu1 %v129_v2  ;;  %97 = vset.pattern.permute.xlu0 %v129_v2 }
   0x2   :  { %v30_v1 = vld [vmem:[%s203_s0] sm:$0xff]  ;;  %57 = vperm.xlu1 %98, %v53_v0  }
   0x3   :  { %34 = vperm.xlu0 %97, %v30_v1  }
   0x4   :  { %13 = vsyncpa [#allocation3], 0  ;;  %v65_v3 = vld [vmem:[%s206_s3] sm:$0xff]  ;;  %s86_s19 = sshll.u32 %s211_s8, 4  ;;  %s87_s19 = int_to_ptr.hbm [resolvable:$true] %s86_s19 }
   0x5   :  { %v41_v4 = vld [vmem:[%s204_s1] sm:$0xff] }
   0x6   :  { %v100_v7 = vld [vmem:[%s207_s4] ss:$0 sm:$0xff]  ;;  %s130_s4 = smov [#allocation2]  }
   0x7   :  { %v102_v8 = vld [vmem:[%s208_s5] ss:$0 sm:$0xff]  ;;  %s84_s17 = sshll.u32 %s130_s4, 4  ;;  %s85_s17 = int_to_ptr.vmem [resolvable:$true] %s84_s17 }
   0x8   :  { %v99_v9 = vld [vmem:[%s209_s6] ss:$0 sm:$0xff] }
   0x9   :  { %v101_v12 = vld [vmem:[%s210_s7] ss:$0 sm:$0xff] }
   0xa   :  { %69 = vperm.xlu1 %98, %v65_v3  }
   0xb   :  { %45 = vperm.xlu0 %97, %v41_v4  }
  0x74   :  { %v58_v5 = vpop.permute.xlu1 %57 }
  0x75   :  { %v35_v6 = vpop.permute.xlu0 %34  ;;  %v63_v15 = vmul.f32 %v99_v9, %v58_v5 }
  0x76   :  { %v40_v11 = vmul.f32 %v100_v7, %v35_v6 }
  0x7c   :  { %v70_v14 = vpop.permute.xlu1 %69 }
  0x7d   :  { %v46_v10 = vpop.permute.xlu0 %45  ;;  %v75_v17 = vmul.f32 %v101_v12, %v70_v14 }
  0x7e   :  { %v51_v13 = vmul.f32 %v102_v8, %v46_v10 }
  0x80   :  { %v52_v16 = vadd.f32 %v51_v13, %v40_v11 }
  0x82   :  { %v64_v18 = vadd.f32 %v63_v15, %v52_v16 }
  0x84   :  { %v76_v19 = vadd.f32 %v75_v17, %v64_v18 }
  0x86   :  { %v77_v20 = vmax.f32 %v76_v19, 0.0 }
  0x88   :  { %78 = vst [vmem:[#allocation2] sm:$0xff] %v77_v20 }
  0x89   :  { %89 = dma.vmem_to_hbm [thread:$0]  %s85_s17, 128, %s87_s19, [#allocation3]  }
  0x8a   :  { %127 = dma.done.wait [#allocation3], 128  }
  0x8b   :  { %128 = vsyncadd [#allocation3], 4294967168 }
  0x8c   :  { %94 = vsyncpa [#allocation3], 1 }

</bundles_post_ra>
